<compile_context>
chip_gen: v7x
topology: tpu7x:2x2x1
jax: 0.10.0
libtpu: 0.0.40
codegen_flags: <defaults>
</compile_context>

<pallas_src>
import functools

import jax
import jax.numpy as jnp
from jax import lax
from jax.experimental import pallas as pl
from jax.experimental.pallas import tpu as pltpu


# ----------------------------------------------------------------------------
# Fused forward + loss kernel.
#   xt_ref   : (D, TILE_N)  features, molecules on lanes
#   w_ref    : (1, D)       linear weights (resident)
#   b_ref    : (1,)         bias scalar in SMEM
#   lab_ref  : (1, TILE_N)  labels tile
#   pred_ref : (1, TILE_N)  sigmoid(xW + b)          (lane-dense output)
#   loss_ref : (1, TILE_N)  (pred - label)^2          (lane-dense output)
#   mean_ref : (1, 1)       mean loss (resident, finalized on last tile)
#   acc_ref  : (1, 1)       VMEM scratch running sum
# ----------------------------------------------------------------------------
def _fused_forward_loss_kernel(xt_ref, w_ref, b_ref, lab_ref,
                               pred_ref, loss_ref, mean_ref,
                               acc_ref, *, tile_n, n_valid, inv_n):
    i = pl.program_id(0)

    @pl.when(i == 0)
    def _init():
        acc_ref[...] = jnp.zeros_like(acc_ref)

    # Wide GEMV on the MXU: output lanes are filled by molecules.
    logits = jnp.dot(w_ref[...], xt_ref[...],
                     preferred_element_type=jnp.float32)      # (1, TILE_N) f32
    logits = logits + b_ref[0]                                 # scalar bias (SMEM)
    pred = jax.nn.sigmoid(logits)                              # EUP
    pred_ref[...] = pred.astype(pred_ref.dtype)

    # MSELoss(reduction='none') on predictions.squeeze(-1) vs labels.float()
    diff = pred - lab_ref[...].astype(jnp.float32)
    per_elem = diff * diff

    # Mask the padded tail of the last tile so the running sum / mean is exact.
    col = i * tile_n + lax.broadcasted_iota(jnp.int32, per_elem.shape, 1)
    per_elem = jnp.where(col < n_valid, per_elem, 0.0)
    loss_ref[...] = per_elem

    acc_ref[...] += jnp.sum(per_elem).reshape(1, 1)

    @pl.when(i == pl.num_programs(0) - 1)
    def _finalize():
        mean_ref[...] = acc_ref[...] * inv_n                   # 1/N is compile-time


def forward_and_loss(x, w, b, labels, *, tile_n=None):
    """Fused forward + compute_loss.

    Args:
      x:      [N, D] float features of NUM_MOLECULES (module contract layout).
      w:      [D] (or [D, 1]) linear head weights.
      b:      scalar (or [1]) bias.
      labels: [N] float target labels.

    Returns:
      (molecule_binary_label [N, 1], mean_loss scalar, label_loss [N])
      matching (model_output, TorchFSMolModelLoss(label_loss=mean), label_loss).
    """
    n, d = x.shape
    w_row = jnp.asarray(w, x.dtype).reshape(1, d)
    b_vec = jnp.asarray(b, jnp.float32).reshape(1)

    # Lane tile over N: multiple of 128, kept modest so 2x double-buffered
    # (D, TILE_N) f32 tiles stay far under even v7x's 64 MiB VMEM.
    if tile_n is None:
        tile_n = 128 if n <= 512 else 512
    n_pad = pl.cdiv(n, tile_n) * tile_n
    grid = (n_pad // tile_n,)

    # Layout plumbing only: put molecules on the lane axis.
    xt = jnp.swapaxes(x, 0, 1)                                 # (D, N)
    if n_pad != n:
        xt = jnp.pad(xt, ((0, 0), (0, n_pad - n)))
    lab = jnp.pad(labels.astype(jnp.float32), (0, n_pad - n)).reshape(1, n_pad)

    kernel = functools.partial(_fused_forward_loss_kernel,
                               tile_n=tile_n, n_valid=n, inv_n=1.0 / n)

    pred_slab, loss_slab, mean2d = pl.pallas_call(
        kernel,
        out_shape=(
            jax.ShapeDtypeStruct((1, n_pad), jnp.float32),     # molecule_binary_label
            jax.ShapeDtypeStruct((1, n_pad), jnp.float32),     # label_loss
            jax.ShapeDtypeStruct((1, 1), jnp.float32),         # mean loss
        ),
        grid_spec=pltpu.PrefetchScalarGridSpec(
            num_scalar_prefetch=0,
            grid=grid,
            in_specs=[
                pl.BlockSpec((d, tile_n), lambda i: (0, i)),   # x^T tile (pipelined)
                pl.BlockSpec((1, d), lambda i: (0, 0)),        # w (resident)
                pl.BlockSpec(memory_space=pltpu.SMEM),         # b scalar in SMEM
                pl.BlockSpec((1, tile_n), lambda i: (0, i)),   # labels tile
            ],
            out_specs=(
                pl.BlockSpec((1, tile_n), lambda i: (0, i)),   # pred (lane-dense)
                pl.BlockSpec((1, tile_n), lambda i: (0, i)),   # per-element loss
                pl.BlockSpec((1, 1), lambda i: (0, 0)),        # mean (resident)
            ),
            scratch_shapes=[pltpu.VMEM((1, 1), jnp.float32)],  # running sum
        ),
        # Mean accumulator is resident across the N axis -> must be "arbitrary".
        compiler_params=pltpu.CompilerParams(
            dimension_semantics=("arbitrary",),
        ),
    )(xt, w_row, b_vec, lab)

    molecule_binary_label = pred_slab[0, :n].reshape(n, 1)     # module contract [N, 1]
    label_loss = loss_slab[0, :n]
    mean_loss = mean2d[0, 0]
    return molecule_binary_label, mean_loss, label_loss


# ----------------------------------------------------------------------------
# Demo / self-check
# ----------------------------------------------------------------------------
if __name__ == "__main__":
    key = jax.random.PRNGKey(0)
    k_x, k_w, k_b, k_lab = jax.random.split(key, 4)

    NUM_MOLECULES = 300          # not a multiple of 128 -> exercises pad + mask
    FEATURE_DIM = 64

    x = jax.random.normal(k_x, (NUM_MOLECULES, FEATURE_DIM), dtype=jnp.float32)
    w = jax.random.normal(k_w, (FEATURE_DIM,), dtype=jnp.float32) * 0.1
    b = (jax.random.normal(k_b, (), dtype=jnp.float32) * 0.1)
    labels = jax.random.bernoulli(k_lab, 0.5, (NUM_MOLECULES,)).astype(jnp.float32)

    molecule_binary_label, mean_loss, label_loss = forward_and_loss(x, w, b, labels)
    jax.block_until_ready((molecule_binary_label, mean_loss, label_loss))

    # Plain-JAX reference (full-precision dot to make the reference exact).
    ref_logits = jnp.dot(x, w.reshape(FEATURE_DIM, 1),
                         precision=jax.lax.Precision.HIGHEST)[:, 0] + b
    ref_pred = jax.nn.sigmoid(ref_logits)
    ref_label_loss = (ref_pred - labels) ** 2
    ref_mean = jnp.mean(ref_label_loss)

    assert molecule_binary_label.shape == (NUM_MOLECULES, 1)
    assert label_loss.shape == (NUM_MOLECULES,)
    assert jnp.allclose(molecule_binary_label[:, 0], ref_pred, atol=2e-3)
    assert jnp.allclose(label_loss, ref_label_loss, atol=4e-3)
    assert jnp.allclose(mean_loss, ref_mean, atol=4e-3)

    print("KERNEL_OK")
</pallas_src>

<mosaic_0001>
module attributes {stable_mosaic.version = 11 : i64} {
  func.func @_fused_forward_loss_kernel(%arg0: i32, %arg1: memref<64x128xf32, #tpu.memory_space<vmem>>, %arg2: memref<1x64xf32, #tpu.memory_space<vmem>>, %arg3: memref<1xf32, #tpu.memory_space<smem>>, %arg4: memref<1x128xf32, #tpu.memory_space<vmem>>, %arg5: memref<1x128xf32, #tpu.memory_space<vmem>>, %arg6: memref<1x128xf32, #tpu.memory_space<vmem>>, %arg7: memref<1x1xf32, #tpu.memory_space<vmem>>, %arg8: memref<1x1xf32, #tpu.memory_space<vmem>>) attributes {dimension_semantics = [#tpu.dimension_semantics<arbitrary>], iteration_bounds = array<i64: 3>, scalar_prefetch = 0 : i64, scratch_operands = 1 : i64, tpu.core_type = #tpu.core_type<tc>, window_params = [{transform_indices = @transform_0, window_bounds = array<i64: 64, 128>}, {pipeline_mode = #tpu.pipeline_mode<synchronous>, transform_indices = @transform_1, window_bounds = array<i64: 1, 64>}, {transform_indices = @transform_2, window_bounds = array<i64: 1>}, {transform_indices = @transform_3, window_bounds = array<i64: 1, 128>}, {transform_indices = @transform_4, window_bounds = array<i64: 1, 128>}, {transform_indices = @transform_5, window_bounds = array<i64: 1, 128>}, {pipeline_mode = #tpu.pipeline_mode<synchronous>, transform_indices = @transform_6, window_bounds = array<i64: 1, 1>}]} {
    %c0_i32 = arith.constant 0 : i32
    %0 = arith.cmpi eq, %arg0, %c0_i32 : i32
    %1 = arith.extui %0 : i1 to i32
    %c0_i32_0 = arith.constant 0 : i32
    %2 = arith.cmpi ne, %1, %c0_i32_0 : i32
    scf.if %2 {
      %cst_19 = arith.constant 0.000000e+00 : f32
      %38 = vector.broadcast %cst_19 : f32 to vector<1x1xf32>
      %c0_20 = arith.constant 0 : index
      %c0_21 = arith.constant 0 : index
      %39 = vector.load %arg8[%c0_20, %c0_21] : memref<1x1xf32, #tpu.memory_space<vmem>>, vector<1x1xf32>
      tpu.vector_store %arg8[%c0_20, %c0_21], %38 {strides = array<i32>} : memref<1x1xf32, #tpu.memory_space<vmem>>, vector<1x1xf32>,
    } else {
    }
    %c0 = arith.constant 0 : index
    %c0_1 = arith.constant 0 : index
    %3 = vector.load %arg2[%c0, %c0_1] : memref<1x64xf32, #tpu.memory_space<vmem>>, vector<1x64xf32>
    %c0_2 = arith.constant 0 : index
    %c0_3 = arith.constant 0 : index
    %4 = vector.load %arg1[%c0_2, %c0_3] : memref<64x128xf32, #tpu.memory_space<vmem>>, vector<64x128xf32>
    %cst = arith.constant dense<0.000000e+00> : vector<1x128xf32>
    %5 = tpu.matmul %3, %4, %cst {dimension_numbers = #tpu.dot_dimension_numbers<[1], [0], [0], [1], [0, 0, 1, 1], [], []>} : vector<1x64xf32>, vector<64x128xf32>, vector<1x128xf32> -> vector<1x128xf32>
    %c0_4 = arith.constant 0 : index
    %6 = memref.load %arg3[%c0_4] : memref<1xf32, #tpu.memory_space<smem>>
    %7 = vector.broadcast %6 : f32 to vector<1x128xf32>
    %8 = arith.addf %5, %7 : vector<1x128xf32>
    %9 = arith.negf %8 : vector<1x128xf32>
    %10 = math.exp %9 : vector<1x128xf32>
    %cst_5 = arith.constant 1.000000e+00 : f32
    %11 = vector.broadcast %cst_5 : f32 to vector<1x128xf32>
    %12 = arith.addf %11, %10 : vector<1x128xf32>
    %13 = arith.divf %11, %12 : vector<1x128xf32>
    %c0_6 = arith.constant 0 : index
    %c0_7 = arith.constant 0 : index
    %14 = vector.load %arg5[%c0_6, %c0_7] : memref<1x128xf32, #tpu.memory_space<vmem>>, vector<1x128xf32>
    tpu.vector_store %arg5[%c0_6, %c0_7], %13 {strides = array<i32>} : memref<1x128xf32, #tpu.memory_space<vmem>>, vector<1x128xf32>,
    %c0_8 = arith.constant 0 : index
    %c0_9 = arith.constant 0 : index
    %15 = vector.load %arg4[%c0_8, %c0_9] : memref<1x128xf32, #tpu.memory_space<vmem>>, vector<1x128xf32>
    %16 = arith.subf %13, %15 : vector<1x128xf32>
    %17 = arith.mulf %16, %16 : vector<1x128xf32>
    %c128_i32 = arith.constant 128 : i32
    %18 = arith.muli %arg0, %c128_i32 : i32
    %19 = tpu.iota {dimensions = array<i32: 1>} : vector<1x128xi32>
    %20 = vector.broadcast %18 : i32 to vector<1x128xi32>
    %21 = arith.addi %20, %19 : vector<1x128xi32>
    %c300_i32 = arith.constant 300 : i32
    %22 = vector.broadcast %c300_i32 : i32 to vector<1x128xi32>
    %23 = arith.cmpi slt, %21, %22 : vector<1x128xi32>
    %cst_10 = arith.constant 0.000000e+00 : f32
    %24 = vector.broadcast %cst_10 : f32 to vector<1x128xf32>
    %25 = arith.select %23, %17, %24 : vector<1x128xi1>, vector<1x128xf32>
    %c0_11 = arith.constant 0 : index
    %c0_12 = arith.constant 0 : index
    %26 = vector.load %arg6[%c0_11, %c0_12] : memref<1x128xf32, #tpu.memory_space<vmem>>, vector<1x128xf32>
    tpu.vector_store %arg6[%c0_11, %c0_12], %25 {strides = array<i32>} : memref<1x128xf32, #tpu.memory_space<vmem>>, vector<1x128xf32>,
    %c0_13 = arith.constant 0 : index
    %c0_14 = arith.constant 0 : index
    %27 = vector.load %arg8[%c0_13, %c0_14] : memref<1x1xf32, #tpu.memory_space<vmem>>, vector<1x1xf32>
    %28 = vector.shape_cast %25 : vector<1x128xf32> to vector<1x1x128xf32>
    %cst_15 = arith.constant dense<0.000000e+00> : vector<1xf32>
    %29 = vector.multi_reduction <add>, %28, %cst_15 [1, 2] : vector<1x1x128xf32> to vector<1xf32>
    %30 = vector.shape_cast %29 : vector<1xf32> to vector<1x1x1xf32>
    %31 = vector.extract %30[0, 0, 0] : f32 from vector<1x1x1xf32>
    %32 = vector.broadcast %31 : f32 to vector<1x1xf32>
    %33 = arith.addf %27, %32 : vector<1x1xf32>
    %c0_16 = arith.constant 0 : index
    %c0_17 = arith.constant 0 : index
    %34 = vector.load %arg8[%c0_16, %c0_17] : memref<1x1xf32, #tpu.memory_space<vmem>>, vector<1x1xf32>
    tpu.vector_store %arg8[%c0_16, %c0_17], %33 {strides = array<i32>} : memref<1x1xf32, #tpu.memory_space<vmem>>, vector<1x1xf32>,
    %c2_i32 = arith.constant 2 : i32
    %35 = arith.cmpi eq, %arg0, %c2_i32 : i32
    %36 = arith.extui %35 : i1 to i32
    %c0_i32_18 = arith.constant 0 : i32
    %37 = arith.cmpi ne, %36, %c0_i32_18 : i32
    scf.if %37 {
      %c0_19 = arith.constant 0 : index
      %c0_20 = arith.constant 0 : index
      %38 = vector.load %arg8[%c0_19, %c0_20] : memref<1x1xf32, #tpu.memory_space<vmem>>, vector<1x1xf32>
      %cst_21 = arith.constant 0.00333333341 : f32
      %39 = vector.broadcast %cst_21 : f32 to vector<1x1xf32>
      %40 = arith.mulf %38, %39 : vector<1x1xf32>
      %c0_22 = arith.constant 0 : index
      %c0_23 = arith.constant 0 : index
      %41 = vector.load %arg7[%c0_22, %c0_23] : memref<1x1xf32, #tpu.memory_space<vmem>>, vector<1x1xf32>
      tpu.vector_store %arg7[%c0_22, %c0_23], %40 {strides = array<i32>} : memref<1x1xf32, #tpu.memory_space<vmem>>, vector<1x1xf32>,
    } else {
    }
    return
  }
  func.func @transform_0(%arg0: i32) -> (i32, i32) {
    %c0_i32 = arith.constant 0 : i32
    %c0_i32_0 = arith.constant 0 : i32
    return %c0_i32, %arg0 : i32, i32
  }
  func.func @transform_1(%arg0: i32) -> (i32, i32) {
    %c0_i32 = arith.constant 0 : i32
    %c0_i32_0 = arith.constant 0 : i32
    %c0_i32_1 = arith.constant 0 : i32
    return %c0_i32, %c0_i32_0 : i32, i32
  }
  func.func @transform_2(%arg0: i32) -> i32 {
    %c0_i32 = arith.constant 0 : i32
    %c0_i32_0 = arith.constant 0 : i32
    return %c0_i32 : i32
  }
  func.func @transform_3(%arg0: i32) -> (i32, i32) {
    %c0_i32 = arith.constant 0 : i32
    %c0_i32_0 = arith.constant 0 : i32
    return %c0_i32, %arg0 : i32, i32
  }
  func.func @transform_4(%arg0: i32) -> (i32, i32) {
    %c0_i32 = arith.constant 0 : i32
    %c0_i32_0 = arith.constant 0 : i32
    return %c0_i32, %arg0 : i32, i32
  }
  func.func @transform_5(%arg0: i32) -> (i32, i32) {
    %c0_i32 = arith.constant 0 : i32
    %c0_i32_0 = arith.constant 0 : i32
    return %c0_i32, %arg0 : i32, i32
  }
  func.func @transform_6(%arg0: i32) -> (i32, i32) {
    %c0_i32 = arith.constant 0 : i32
    %c0_i32_0 = arith.constant 0 : i32
    %c0_i32_1 = arith.constant 0 : i32
    return %c0_i32, %c0_i32_0 : i32, i32
  }
}

</mosaic_0001>

<bundles_post_ra>
// kernel: tpu_custom_call.1
= control target key start
LH: loop header
LB: loop body
LE: loop exit
PB: predicated region body
PF: predicated region fallthrough
CT: control target
= control target key end

     0   :  { %s1173_s0 = inlined_call_operand.hbm [shape: f32[64,384], index: 0, kind: input, shape index: {}]   ;;  %s1174_s1 = inlined_call_operand.vmem [shape: f32[1,64], index: 1, kind: input, shape index: {}]   ;;  %s1175_s2 = inlined_call_operand.<no memory space> [shape: f32[1], index: 2, kind: input, shape index: {}]   ;;  %s1176_s3 = inlined_call_operand.vmem [shape: f32[1,384], index: 3, kind: input, shape index: {}]   ;;  %s1177_s4 = inlined_call_operand.hbm [shape: f32[1,384], index: 4, kind: output, shape index: {0}]   ;;  %s1178_s5 = inlined_call_operand.hbm [shape: f32[1,384], index: 5, kind: output, shape index: {1}]   ;;  %s1179_s6 = inlined_call_operand.hbm [shape: f32[1,1], index: 6, kind: output, shape index: {2}]  }
   0x1   :  { %12 = sst [smem:[#allocation3]] %s1175_s2 }
   0x2   :  { %13 = vsyncpa [#allocation5], 0 }
   0x3   :  { %15 = vsyncpa [#allocation5 + $0x1], 0 }
   0x4   :  { %16 = vsyncpa [#allocation6], 0 }
   0x5   :  { %18 = vsyncpa [#allocation6 + $0x1], 0 }
   0x6   :  { %19 = vsyncpa [#allocation9], 0 }
   0x7   :  { %21 = vsyncpa [#allocation9 + $0x1], 0  ;;  %s914_s23 = smov 0   ;;  %s916_s24 = smov 0  }
   0x8   :  { %s918_s25 = smov 0   ;;  %s920_s26 = smov 0  }
   0x9 LB: > { %s935_s2 = sadd.s32 4294967295, %s863_s26   ;;  %s576_s27 = sadd.s32 4294967294, %s863_s26   ;;  %s863_s26 = sphi %s920_s26, %s1198_s26   ;;  %s859_s25 = sphi %s918_s25, %s1197_s25   ;;  %s855_s24 = sphi %s916_s24, %s1196_s24   ;;  %s851_s23 = sphi %s914_s23, %s1195_s23  }
   0xa   : > { %s939_s28 = sadd.s32 1, %s863_s26   ;;  %s34_s29 = sadd.s32 1, %s859_s25 }
   0xb   : > { %s31_s30 = ssub.s32 %s863_s26, %s939_s28  ;;  %p41_p0 = scmp.ne.s32.totalorder %s859_s25, %s855_s24 }
   0xc   : > { %p32_p1 = scmp.eq.s32.totalorder %s31_s30, 0  ;;  %p42_p2 = scmp.eq.s32.totalorder %s863_s26, 0 }
   0xd   : > { %p47_p3 = scmp.ne.s32.totalorder %s855_s24, %s851_s23  ;;  %p48_p4 = scmp.eq.s32.totalorder %s935_s2, 0 }
   0xe   : > { %s951_s7 = scalar_select %p32_p1, %s859_s25, %s34_s29  }
   0xf   : > { %p953_p5 = por %p42_p2, %p41_p0  ;;  %p957_p6 = por %p48_p4, %p47_p3 }
  0x10   : > { %p1180_p7 = scmp.eq.s32.totalorder %s935_s2, 2  ;;  %p145_p8 = scmp.eq.s32.totalorder %s576_s27, 2 }
  0x11   : > { %p657_p9 = scmp.lt.s32.totalorder %s863_s26, 3  ;;  %s218_s12 = sand.u32 1, %s859_s25  }
  0x12   : > { %p967_p10 = por %p1180_p7, %p41_p0  ;;  %p971_p11 = por %p145_p8, %p47_p3 }
  0x13   : > { %s580_s13 = sshll.u32 %s863_s26, 7  ;;  %s579_s14 = sshll.u32 %s218_s12, 6 }
  0x14   : > { %s1184_s10 = scalar_select %p967_p10, 1, 0 }
  0x15   : > { %s1185_s11 = scalar_select %p971_p11, 1, 0 }
  0x16   : > { %s980_s17 = scalar_lea.hbm %s1173_s0, %s580_s13  ;;  %s222_s18 = scalar_lea.vmem [#allocation4], %s579_s14 }
  0x17   : > { %s228_s19 = sshll.u32 %s222_s18, 4  ;;  %p984_p12 = pnand %p657_p9, %p953_p5  ;;  %s988_s19 = int_to_ptr.vmem [resolvable:$true] %s228_s19 }
  0x18   : > { %s991_s21 = scalar_lea.sflag [#allocation5], %s218_s12  ;;  %s705_s22 = scalar_lea.hbm %s980_s17, 1024 }
  0x19   : > { %p706_p0 = scmp.ne.s32.totalorder %s980_s17, %s705_s22  ;;  %p707_p1 = pneg %p984_p12 }
  0x1a   : > { %s710_s8 = scalar_lea.hbm %s1173_s0, 3072  ;;  %p711_p4 = scmp.lt.u32.totalorder %s980_s17, %s1173_s0 }
  0x1b   : > { %p708_p2 = pnand %p707_p1, %p706_p0  ;;  %p712_p5 = scmp.lt.u32.totalorder %s710_s8, %s705_s22 }
  0x1c   : > { %p714_p9 = scmp.lt.u32.totalorder %s705_s22, %s980_s17 }
  0x1d   : > { %p709_p3 = pneg %p708_p2  ;;  %p713_p8 = por %p712_p5, %p711_p4 }
  0x1f   : > { %p715_p7 = por %p714_p9, %p713_p8 }
  0x21   : > { %p716_p13 = pnand %p715_p7, %p709_p3 }
  0x23   : > { %719 = shalt.err (!%p716_p13)
}
  0x24   : > { %s720_s12 = scalar_lea.vmem %s988_s19, 1024  ;;  %s865_s15 = smov [#allocation4]  }
  0x25   : > { %p721_p0 = scmp.ne.s32.totalorder %s988_s19, %s720_s12  ;;  %s725_s16 = sshll.u32 %s865_s15, 4  ;;  %s726_s16 = int_to_ptr.vmem [resolvable:$false] %s725_s16 }
  0x26   : > { %s727_s18 = scalar_lea.vmem %s726_s16, 2048  ;;  %p728_p10 = scmp.lt.s32.totalorder %s988_s19, %s726_s16 }
  0x27   : > { %p723_p2 = pnand %p721_p0, %p707_p1  ;;  %p729_p4 = scmp.lt.s32.totalorder %s727_s18, %s720_s12 }
  0x29   : > { %p724_p11 = pneg %p723_p2  ;;  %p730_p5 = por %p729_p4, %p728_p10 }
  0x2b   : > { %p731_p8 = pnand %p730_p5, %p724_p11 }
  0x2d   : > { %734 = shalt.err (!%p731_p8)
}
  0x2e   : > { %s866_s22 = smov 384   ;;  %s867_s29 = smov 128  }
  0x2f   : > { %s868_s30 = smov 8   ;;  %p242_p7 = scmp.lt.s32.totalorder %s863_s26, 4 }
  0x30   : > { %649 = dma.hbm_to_vmem [thread:$0]  (!%p984_p12), %s980_s17, 1024, %s988_s19, %s991_s21, %s866_s22, %s867_s29, %s868_s30  }
  0x31   : > { %p1187_p13 = scmp.ge.s32.totalorder %s863_s26, 1 }
  0x33   : > { %p243_p1 = pnand %p1187_p13, %p242_p7 }
  0x34   : > { %s1023_s8 = sand.u32 (!%p243_p1), 1, %s855_s24  }
  0x35   : > { %246 = sbr.rel (%p243_p1) target bundleno = 629 (0x275), region = 36  ;;  %s582_s13 = sshll.u32 (!%p243_p1), %s1023_s8, 6 }
  0x36   : > { %s249_s14 = scalar_lea.sflag (!%p243_p1), [#allocation5], %s1023_s8  ;;  %s1027_s12 = scalar_lea.vmem (!%p243_p1), [#allocation4], %s582_s13 }
  0x3c   : > { %834 = dma.done.wait (%p957_p6), %s249_s14, 1024  }
  0x3d   : > { %836 = vsyncadd (%p957_p6), %s249_s14, 4294966272  ;;  %p287_p10 = scmp.lt.s32.totalorder %s935_s2, 2  ;;  %s278_s15 = scalar_lea.vmem [#allocation7], %s1023_s8 }
  0x3e   : > { %s284_s16 = scalar_lea.vmem [#allocation8], %s1023_s8  ;;  %p583_p11 = scmp.ne.s32.totalorder %s935_s2, 0 }
  0x3f   : > { %s1035_s17 = scalar_select %p287_p10, %s935_s2, 2 }
  0x40   : > { %293 = sbr.rel (%p583_p11) target bundleno = 71 (0x47), region = 44  ;;  %vm294_vm0 = vcmask (!%p583_p11), 0   ;;  %v869_v0 = vmov (!%p583_p11), 0.0  }
  0x41   : > { %s289_s21 = scalar_lea.vmem %s1176_s3, %s1035_s17  ;;  %295 = vst.msk [vmem:[#allocation2] sm:$0x1] (!%p583_p11), %vm294_vm0, %v869_v0 }
  0x47 PF: > { %v297_v1 = vld [vmem:[%s1027_s12] sm:$0xff]  ;;  %v298_v2 = vld [vmem:[%s1027_s12 + $0x8] sm:$0xff]  ;;  %v299_v3 = vld [vmem:[%s1027_s12 + $0x10] sm:$0xff]  ;;  %v870_v4 = vmov 0.0|0.0   ;;  %vm871_vm1 = vmmov 0   ;;  %v872_v7 = vmov 0.0   ;;  %v392_v23 = vlaneseq }
  0x48   : > { %622 = vmatprep.subr.bf16.mxu0 %v870_v4  ;;  %v623_v5 = vpack.c.bf16 %v298_v2, %v297_v1  ;;  %v300_v6 = vld [vmem:[%s1027_s12 + $0x18] sm:$0xff]  ;;  %619 = vmatprep.mubr.msk.f32.mxu0 %vm871_vm1, %v872_v7  ;;  %v301_v9 = vld [vmem:[%s1027_s12 + $0x20] sm:$0xff]  ;;  %v302_v10 = vld [vmem:[%s1027_s12 + $0x28] sm:$0xff]  ;;  %vm307_vm2 = vcmask 523264   ;;  %s305_s22 = sld [smem:[#allocation3]]  ;;  %s586_s29 = sshll.u32 %s935_s2, 7 }
  0x49   : > { %v626_v8 = vpack.c.bf16 %v300_v6, %v299_v3  ;;  %v629_v11 = vpack.c.bf16 %v302_v10, %v301_v9  ;;  %v303_v12 = vld [vmem:[%s1027_s12 + $0x30] sm:$0xff]  ;;  %v304_v13 = vld [vmem:[%s1027_s12 + $0x38] sm:$0xff]  ;;  %v393_v24 = vand.u32 127, %v392_v23  ;;  %v394_v25 = vstv %s586_s29  ;;  %p587_p6 = scmp.ne.s32.totalorder %s935_s2, 2 }
  0x4a   : > { %624 = vmatpush3.bf16.msra.mxu0 %v623_v5  ;;  %v632_v14 = vpack.c.bf16 %v304_v13, %v303_v12  ;;  %v296_v15 = vld [vmem:[%s1174_s1] sm:$0x1]  ;;  %vm400_vm4 = vcmask 1040384   ;;  %vm413_vm5 = vcmask 0  }
  0x4b   : > { %625 = vmatprep.subr.bf16.mxu0 %v870_v4  ;;  %v388_v26 = vld [vmem:[%s289_s21] sm:$0x1]  ;;  %v395_v27 = vadd.s32 %v394_v25, %v393_v24 }
  0x4c   : > { %v399_v40 = vld [vmem:[#allocation2] sm:$0x1] }
  0x4d   : > { %vm396_vm3 = vcmp.lt.s32.totalorder %v395_v27, 300 }
  0x4e   : > { %627 = vmatpush3.bf16.msra.mxu0 %v626_v8  ;;  %v306_v16 = vstv %s305_s22 }
  0x4f   : > { %628 = vmatprep.subr.bf16.mxu0 %v870_v4 }
  0x52   : > { %630 = vmatpush3.bf16.msra.mxu0 %v629_v11 }
  0x53   : > { %631 = vmatprep.subr.bf16.mxu0 %v870_v4 }
  0x56   : > { %633 = vmatpush3.bf16.msra.mxu0 %v632_v14 }
  0x59   : > { %620 = vmatmul.mubr.msk.f32.vlgmr.msra.gmra.mrb[0].mxu0 %vm307_vm2, %v296_v15 }
 0x12c   : > { %v377_v17 = vpop.f32.mrb[0].mxu0 }
 0x12d   : > { %v378_v18 = vadd.f32 %v377_v17, %v306_v16  ;;  %v621_v19 = vpop.f32.mrb[1].mxu0 }
 0x12f   : > { %v585_v20 = vmul.f32 -1.442695, %v378_v18 }
 0x131   : > { %701 = vpow2.f32 %v585_v20 }
 0x13b   : > { %v702_v21 = vpop.eup %701 }
 0x13c   : > { %v384_v22 = vadd.f32 1.0, %v702_v21 }
 0x13e   : > { %703 = vrcp.f32 %v384_v22 }
 0x148   : > { %v704_v28 = vpop.eup %703 }
 0x149   : > { %387 = vst [vmem:[%s278_s15] sm:$0x1] %v704_v28  ;;  %v389_v29 = vsub.f32 %v704_v28, %v388_v26 }
 0x14b   : > { %v390_v30 = vmul.f32 %v389_v29, %v389_v29 }
 0x14d   : > { %v397_v31 = vsel %vm396_vm3, %v390_v30, 0.0 }
 0x14e   : > { %398 = vst [vmem:[%s284_s16] sm:$0x1] %v397_v31  ;;  %v401_v32 = vsel %vm400_vm4, %v397_v31, 0.0 }
 0x14f   : > { %402 = vadd.xlane.f32.xlu0 %v401_v32 }
 0x1dc   : > { %v403_v33 = vpop.xlane.xlu0 %402 }
 0x1dd   : > { %v404_v34 = vrot.slane %v403_v33, 4 }
 0x1df   : > { %v405_v35 = vadd.f32 %v404_v34, %v403_v33 }
 0x1e1   : > { %v406_v36 = vrot.slane %v405_v35, 2 }
 0x1e3   : > { %v407_v37 = vadd.f32 %v406_v36, %v405_v35 }
 0x1e5   : > { %v408_v38 = vrot.slane %v407_v37, 1 }
 0x1e7   : > { %v409_v39 = vadd.f32 %v408_v38, %v407_v37 }
 0x1e9   : > { %634 = vpush %v409_v39 }
 0x218   : > { %418 = sbr.rel (%p587_p6) target bundleno = 553 (0x229), region = 48 }
 0x21a   : > { %s635_s14 = spop %634 }
 0x21b   : > { %v411_v41 = vstv %s635_s14 }
 0x21c   : > { %v412_v42 = vadd.f32 %v411_v41, %v399_v40 }
 0x21e   : > { %414 = vst.msk [vmem:[#allocation2] sm:$0x1] %vm413_vm5, %v412_v42 }
 0x225   : > { %v419_v43 = vld [vmem:[#allocation2] sm:$0x1] }
 0x226   : > { %v420_v44 = vmul.f32 0.0033333334, %v419_v43 }
 0x228   : > { %421 = vst.msk [vmem:[#allocation10] sm:$0x1] %vm413_vm5, %v420_v44 }
 0x229 PF: > { %s426_s12 = sand.u32 1, %s935_s2   ;;  %s588_s17 = sshll.u32 %s935_s2, 4 }
 0x22a   : > { %s1071_s21 = scalar_lea.hbm %s1178_s5, %s588_s17  ;;  %s452_s9 = sshll.u32 %s284_s16, 4  ;;  %s1075_s9 = int_to_ptr.vmem [resolvable:$true] %s452_s9 }
 0x22b   : > { %s1080_s29 = scalar_lea.hbm %s1177_s4, %s588_s17  ;;  %s427_s30 = scalar_lea.sflag [#allocation9], %s426_s12 }
 0x22c   : > { %s735_s13 = scalar_lea.vmem %s1075_s9, 16  ;;  %p1188_p3 = scmp.ne.s32.totalorder %s1184_s10, 0 }
 0x22d   : > { %p736_p12 = scmp.ne.s32.totalorder %s1075_s9, %s735_s13  ;;  %s873_s14 = smov [#allocation8]  }
 0x22e   : > { %s739_s19 = sshll.u32 %s873_s14, 4  ;;  %s740_s19 = int_to_ptr.vmem [resolvable:$false] %s739_s19 }
 0x22f   : > { %p737_p9 = pnand %p736_p12, %p1188_p3  ;;  %s741_s16 = scalar_lea.vmem %s740_s19, 32 }
 0x230   : > { %p742_p2 = scmp.lt.s32.totalorder %s1075_s9, %s740_s19  ;;  %p743_p4 = scmp.lt.s32.totalorder %s741_s16, %s735_s13 }
 0x231   : > { %p738_p0 = pneg %p737_p9 }
 0x232   : > { %p744_p5 = por %p743_p4, %p742_p2 }
 0x234   : > { %p745_p8 = pnand %p744_p5, %p738_p0 }
 0x236   : > { %748 = shalt.err (!%p745_p8)
}
 0x237   : > { %s749_s12 = scalar_lea.hbm %s1071_s21, 16  ;;  %s753_s18 = scalar_lea.hbm %s1178_s5, 48 }
 0x238   : > { %p750_p7 = scmp.ne.s32.totalorder %s1071_s21, %s749_s12  ;;  %p754_p10 = scmp.lt.u32.totalorder %s1071_s21, %s1178_s5 }
 0x239   : > { %p755_p11 = scmp.lt.u32.totalorder %s753_s18, %s749_s12  ;;  %p757_p12 = scmp.lt.u32.totalorder %s749_s12, %s1071_s21 }
 0x23a   : > { %p751_p13 = pnand %p750_p7, %p1188_p3 }
 0x23b   : > { %p756_p6 = por %p755_p11, %p754_p10 }
 0x23c   : > { %p752_p1 = pneg %p751_p13 }
 0x23d   : > { %p758_p9 = por %p757_p12, %p756_p6 }
 0x23f   : > { %p759_p0 = pnand %p758_p9, %p752_p1 }
 0x241   : > { %762 = shalt.err (!%p759_p0)
}
 0x242   : > { %639 = dma.vmem_to_hbm [thread:$0]  (%p1188_p3), %s1075_s9, 16, %s1071_s21, %s427_s30  }
 0x243   : > { %s439_s13 = sshll.u32 %s278_s15, 4  ;;  %s874_s19 = smov [#allocation10]   ;;  %s1105_s13 = int_to_ptr.vmem [resolvable:$true] %s439_s13 }
 0x244   : > { %s1107_s16 = sshll.u32 %s874_s19, 4  ;;  %s423_s12 = scalar_lea.sflag [#allocation6], %s1023_s8  ;;  %s464_s16 = int_to_ptr.vmem [resolvable:$true] %s1107_s16 }
 0x245   : > { %s763_s17 = scalar_lea.vmem %s1105_s13, 16  ;;  %s875_s20 = smov [#allocation7]  }
 0x246   : > { %p764_p2 = scmp.ne.s32.totalorder %s1105_s13, %s763_s17  ;;  %s767_s18 = sshll.u32 %s875_s20, 4  ;;  %s768_s18 = int_to_ptr.vmem [resolvable:$false] %s767_s18 }
 0x247   : > { %s769_s21 = scalar_lea.vmem %s768_s18, 32  ;;  %p770_p8 = scmp.lt.s32.totalorder %s1105_s13, %s768_s18 }
 0x248   : > { %p765_p4 = pnand %p764_p2, %p1188_p3  ;;  %p771_p7 = scmp.lt.s32.totalorder %s769_s21, %s763_s17 }
 0x24a   : > { %p766_p5 = pneg %p765_p4  ;;  %p772_p13 = por %p771_p7, %p770_p8 }
 0x24c   : > { %p773_p1 = pnand %p772_p13, %p766_p5 }
 0x24e   : > { %776 = shalt.err (!%p773_p1)
}
 0x24f   : > { %s777_s8 = scalar_lea.hbm %s1080_s29, 16  ;;  %s781_s30 = scalar_lea.hbm %s1177_s4, 48 }
 0x250   : > { %p778_p10 = scmp.ne.s32.totalorder %s1080_s29, %s777_s8  ;;  %p782_p12 = scmp.lt.u32.totalorder %s1080_s29, %s1177_s4 }
 0x251   : > { %p783_p9 = scmp.lt.u32.totalorder %s781_s30, %s777_s8  ;;  %p785_p2 = scmp.lt.u32.totalorder %s777_s8, %s1080_s29 }
 0x252   : > { %p779_p11 = pnand %p778_p10, %p1188_p3 }
 0x253   : > { %p784_p0 = por %p783_p9, %p782_p12 }
 0x254   : > { %p780_p6 = pneg %p779_p11 }
 0x255   : > { %p786_p4 = por %p785_p2, %p784_p0 }
 0x257   : > { %p787_p5 = pnand %p786_p4, %p780_p6 }
 0x259   : > { %790 = shalt.err (!%p787_p5)
}
 0x25a   : > { %638 = dma.vmem_to_hbm [thread:$0]  (%p1188_p3), %s1105_s13, 16, %s1080_s29, %s423_s12  }
 0x25b   : > { %s791_s19 = scalar_lea.vmem %s464_s16, 16  ;;  %p1189_p7 = scmp.eq.s32.totalorder %s935_s2, 2 }
 0x25c   : > { %p792_p8 = scmp.ne.s32.totalorder %s464_s16, %s791_s19  ;;  %s797_s17 = scalar_lea.vmem %s464_s16, 32 }
 0x25d   : > { %p798_p10 = scmp.lt.s32.totalorder %s464_s16, %s464_s16  ;;  %p799_p11 = scmp.lt.s32.totalorder %s797_s17, %s791_s19 }
 0x25e   : > { %p793_p13 = pnand %p792_p8, %p1189_p7 }
 0x25f   : > { %p800_p12 = por %p799_p11, %p798_p10 }
 0x260   : > { %p794_p1 = pneg %p793_p13 }
 0x262   : > { %p801_p9 = pnand %p800_p12, %p794_p1 }
 0x264   : > { %804 = shalt.err (!%p801_p9)
}
 0x265   : > { %s805_s10 = scalar_lea.hbm %s1179_s6, 16  ;;  %p1190_p6 = pmov %p1189_p7 }
 0x266   : > { %p806_p3 = scmp.ne.s32.totalorder %s1179_s6, %s805_s10  ;;  %p811_p4 = scmp.lt.u32.totalorder %s805_s10, %s1179_s6 }
 0x268   : > { %p807_p0 = pnand %p806_p3, %p1190_p6 }
 0x26a   : > { %p808_p2 = pneg %p807_p0 }
 0x26c   : > { %p813_p5 = pnand %p811_p4, %p808_p2 }
 0x26e   : > { %816 = shalt.err (!%p813_p5)
}
 0x26f   : > { %p1191_p8 = pmov %p1190_p6  ;;  %p1192_p7 = pmov %p1190_p6 }
 0x271   : > { %641 = dma.vmem_to_hbm [thread:$0]  (%p1191_p8), %s464_s16, 16, %s1179_s6, [#allocation9]  }
 0x272   : > { %838 = dma.done.wait (%p1192_p7), [#allocation9], 16   ;;  %p1193_p13 = pmov %p1190_p6 }
 0x274   : > { %840 = vsyncadd (%p1193_p13), [#allocation9], 4294967280 }
 0x275 PF: > { %p660_p1 = scmp.ge.s32.totalorder %s863_s26, 2  ;;  %s479_s9 = sand.u32 1, %s851_s23  }
 0x276   : > { %p1194_p10 = scmp.ne.s32.totalorder %s1185_s11, 0  ;;  %s480_s30 = scalar_lea.sflag [#allocation6], %s479_s9 }
 0x278   : > { %p651_p11 = pnand %p660_p1, %p1194_p10 }
 0x27a   : > { %842 = dma.done.wait (!%p651_p11), %s480_s30, 16  }
 0x27b   : > { %844 = vsyncadd (!%p651_p11), %s480_s30, 4294967280  ;;  %s487_s22 = sand.u32 1, %s576_s27  }
 0x27c   : > { %s488_s16 = scalar_lea.sflag [#allocation9], %s487_s22 }
 0x27d   : > { %846 = dma.done.wait (!%p651_p11), %s488_s16, 16  }
 0x27e   : > { %848 = vsyncadd (!%p651_p11), %s488_s16, 4294967280  ;;  %p24_p12 = scmp.ge.s32.totalorder %s939_s28, 5   ;;  %s1195_s23 = smov %s855_s24 }
 0x27f   : > { %s1196_s24 = smov %s859_s25  ;;  %s1197_s25 = smov %s951_s7 }
 0x280   : > { %s1198_s26 = smov %s939_s28  ;;  %26 = sbr.rel (!%p24_p12) target bundleno = 9 (0x9), region = 117 }
 0x287   :  { %492 = vsyncpa [#allocation5], 1 }
 0x288   :  { %494 = vsyncpa [#allocation5 + $0x1], 1 }
 0x289   :  { %495 = vsyncpa [#allocation6], 1 }
 0x28a   :  { %497 = vsyncpa [#allocation6 + $0x1], 1 }
 0x28b   :  { %498 = vsyncpa [#allocation9], 1 }
 0x28c   :  { %500 = vsyncpa [#allocation9 + $0x1], 1 }

</bundles_post_ra>
